<compile_context>
chip_gen: v7x
topology: tpu7x:2x2x1
jax: 0.10.0
libtpu: 0.0.40
codegen_flags: <defaults>
</compile_context>

<pallas_src>
from functools import partial

import jax
import jax.numpy as jnp
from jax.experimental import pallas as pl
from jax.experimental.pallas import tpu as pltpu

EPS = 1e-5


def _fill_taps(x_f32, masks, t_ref, *, W, Cin, K, K_pad):
    """Write the 9 zero-padded 3x3 im2col taps into t_ref (K_pad, P).

    x_f32:  (Cin, P) f32 tile of ONE image (so lane rolls never wrap across
            images); masks: (9, P) f32 {0,1} boundary masks, tap-major order.
    Taps are stored tap-major / Cin-minor to match the packed weight layout.
    """
    P = x_f32.shape[-1]
    if K_pad > K:
        # Keep the K padding rows deterministic (padded weight cols are zero,
        # but uninitialized VMEM could hold NaNs).
        t_ref[pl.ds(K, K_pad - K), :] = jnp.zeros((K_pad - K, P), t_ref.dtype)
    tap = 0
    for dy in (-1, 0, 1):
        for dx in (-1, 0, 1):
            d = dy * W + dx
            # shifted[p] = x[p + d]; rolls stay in f32 (robust lowering, and
            # v5e prefers f32 elementwise); cast to the MXU dtype on store.
            shifted = x_f32 if d == 0 else pltpu.roll(x_f32, (-d) % P, axis=1)
            m = masks[tap:tap + 1, :]                      # (1, P) f32 {0,1}
            t_ref[pl.ds(tap * Cin, Cin), :] = (shifted * m).astype(t_ref.dtype)
            tap += 1


def _conv_stats_kernel(x_ref, w_ref, mask_ref, stats_ref, t_ref, *,
                       W, Cin, K, K_pad):
    """Pass 1: conv for one image + per-channel (sum, sum_sq) partials."""
    x = x_ref[...].astype(jnp.float32)                      # (Cin, P)
    _fill_taps(x, mask_ref[...], t_ref, W=W, Cin=Cin, K=K, K_pad=K_pad)
    # Single unbatched im2col matmul: (Cout, K_pad) @ (K_pad, P), f32 acc.
    y = jnp.dot(w_ref[...], t_ref[...],
                preferred_element_type=jnp.float32)         # (Cout, P)
    # Channel sums via the MXU (ones-vector matmul) instead of XLU reductions.
    P = x.shape[-1]
    ones = jnp.ones((P, 1), jnp.float32)
    s = jnp.dot(y, ones, preferred_element_type=jnp.float32)        # (Cout, 1)
    ss = jnp.dot(y * y, ones, preferred_element_type=jnp.float32)   # (Cout, 1)
    stats_ref[...] = jnp.concatenate([s, ss], axis=1)               # (Cout, 2)


def _conv_apply_kernel(x_ref, w_ref, mask_ref, scale_ref, shift_ref, o_ref,
                       t_ref, *, W, Cin, K, K_pad):
    """Pass 2: recompute conv, apply folded BN affine + ReLU, store."""
    x = x_ref[...].astype(jnp.float32)                      # (Cin, P)
    _fill_taps(x, mask_ref[...], t_ref, W=W, Cin=Cin, K=K, K_pad=K_pad)
    y = jnp.dot(w_ref[...], t_ref[...],
                preferred_element_type=jnp.float32)         # (Cout, P)
    y = y * scale_ref[...] + shift_ref[...]                 # (Cout,1) broadcast
    o_ref[...] = jnp.maximum(y, 0.0).astype(o_ref.dtype)


def conv_bn_relu_forward(x_nchw, weight, gamma, beta, *,
                         eps=EPS, mxu_dtype=jnp.bfloat16):
    """Fused ConvBnReLU forward (training-mode BatchNorm batch statistics).

    x_nchw: (N, Cin, H, W); weight: (Cout, Cin, 3, 3) PyTorch OIHW (no bias);
    gamma/beta: (Cout,) BatchNorm2d affine parameters.
    `mxu_dtype` is the accuracy/perf knob for the matmul operands (bf16
    default; f32 for bitwise-tight numerics).
    """
    N, Cin, H, W = x_nchw.shape
    Cout, Cin2, kh, kw = weight.shape
    assert Cin2 == Cin and kh == 3 and kw == 3
    # TODO(synk): only the module defaults (kernel_size=3, stride=1, pad=1) are
    # implemented; other strides / kernel sizes need a different tap set.
    P = H * W
    K = 9 * Cin
    K_pad = -(-K // 8) * 8                                  # 8-aligned contraction dim

    itemsize = jnp.dtype(x_nchw.dtype).itemsize
    mxu_size = jnp.dtype(mxu_dtype).itemsize

    # Free row-major reshape; H*W becomes the lane-dense last dim.
    x3 = x_nchw.reshape(N, Cin, P)
    # (Cout, Cin, ky, kx) -> (Cout, (ky*3+kx)*Cin + ci), K padded with zeros.
    w2 = jnp.transpose(weight, (0, 2, 3, 1)).reshape(Cout, K)
    if K_pad > K:
        w2 = jnp.pad(w2, ((0, 0), (0, K_pad - K)))
    w2 = w2.astype(mxu_dtype)

    # Precompute the 9 zero-padding boundary masks once (tap-major order,
    # matching the kernel loop) -> no iota/div/mod/compare work in the kernel.
    rows = jnp.arange(P, dtype=jnp.int32) // W
    cols = jnp.arange(P, dtype=jnp.int32) % W
    mlist = []
    for dy in (-1, 0, 1):
        for dx in (-1, 0, 1):
            mlist.append((rows + dy >= 0) & (rows + dy < H) &
                         (cols + dx >= 0) & (cols + dx < W))
    mask9 = jnp.stack(mlist, axis=0).astype(jnp.float32)    # (9, P)

    # BlockSpecs: one image per grid step; weights/masks/affine params resident.
    x_spec = pl.BlockSpec((None, Cin, P), lambda n: (n, 0, 0))
    if N >= 4:
        # Deeper input buffering only pays off with enough grid steps to hide
        # DMA latency behind the VPU/XLU tap work.
        x_spec = pl.BlockSpec((None, Cin, P), lambda n: (n, 0, 0),
                              pipeline_mode=pl.Buffered(3))
    w_spec = pl.BlockSpec((Cout, K_pad), lambda n: (0, 0))
    m_spec = pl.BlockSpec((9, P), lambda n: (0, 0))
    cvec_spec = pl.BlockSpec((Cout, 1), lambda n: (0, 0))

    # Explicit VMEM budget: buffered x/out tiles + weights + bf16 tap scratch
    # + f32 conv tile, with headroom (fits v5e/v6e/v7x scoped defaults).
    x_blk = Cin * P * itemsize
    o_blk = Cout * P * itemsize
    est = (3 * (x_blk + o_blk) + Cout * K_pad * mxu_size + K_pad * P * mxu_size
           + 2 * Cout * P * 4 + 9 * P * 4 + (2 << 20))
    vmem_limit = int(min(max(est, 4 << 20), 64 << 20))
    cparams = pltpu.CompilerParams(
        dimension_semantics=("parallel",), vmem_limit_bytes=vmem_limit)

    # TODO(synk): for very large H*W, additionally tile the spatial dim (with a
    # one-row halo per tile) instead of holding a full image per grid step.

    # ---- Pass 1: conv + per-image partial BN statistics ----
    stats = pl.pallas_call(
        partial(_conv_stats_kernel, W=W, Cin=Cin, K=K, K_pad=K_pad),
        out_shape=jax.ShapeDtypeStruct((N, Cout, 2), jnp.float32),
        grid=(N,),
        in_specs=[x_spec, w_spec, m_spec],
        out_specs=pl.BlockSpec((None, Cout, 2), lambda n: (n, 0, 0)),
        scratch_shapes=[pltpu.VMEM((K_pad, P), mxu_dtype)],
        compiler_params=cparams,
    )(x3, w2, mask9)

    # Tiny (Cout,)-sized reduction + BN fold; left to XLA.
    cnt = jnp.float32(N * P)
    mean = jnp.sum(stats[:, :, 0], axis=0) / cnt
    var = jnp.maximum(jnp.sum(stats[:, :, 1], axis=0) / cnt - mean * mean, 0.0)
    scale = gamma.astype(jnp.float32) * jax.lax.rsqrt(var + eps)
    shift = beta.astype(jnp.float32) - mean * scale
    scale2 = scale.reshape(Cout, 1)
    shift2 = shift.reshape(Cout, 1)
    # TODO(synk): running-mean/var buffer updates (training-time side effect of
    # nn.BatchNorm2d) are not emitted; only the forward output is produced.

    # ---- Pass 2: conv recompute + fused BN affine + ReLU ----
    out3 = pl.pallas_call(
        partial(_conv_apply_kernel, W=W, Cin=Cin, K=K, K_pad=K_pad),
        out_shape=jax.ShapeDtypeStruct((N, Cout, P), x_nchw.dtype),
        grid=(N,),
        in_specs=[x_spec, w_spec, m_spec, cvec_spec, cvec_spec],
        out_specs=pl.BlockSpec((None, Cout, P), lambda n: (n, 0, 0)),
        scratch_shapes=[pltpu.VMEM((K_pad, P), mxu_dtype)],
        compiler_params=cparams,
    )(x3, w2, mask9, scale2, shift2)

    return out3.reshape(N, Cout, H, W)                      # free reshape back


# ---------------- pure-JAX reference (for sanity check) ----------------
def conv_bn_relu_ref(x, weight, gamma, beta, eps=EPS):
    dn = ('NCHW', 'OIHW', 'NCHW')
    y = jax.lax.conv_general_dilated(x, weight, (1, 1), ((1, 1), (1, 1)),
                                     dimension_numbers=dn)
    mean = y.mean(axis=(0, 2, 3), keepdims=True)
    var = ((y - mean) ** 2).mean(axis=(0, 2, 3), keepdims=True)
    y = (y - mean) / jnp.sqrt(var + eps) * gamma.reshape(1, -1, 1, 1) \
        + beta.reshape(1, -1, 1, 1)
    return jax.nn.relu(y)


if __name__ == "__main__":
    N, Cin, Cout, H, W = 2, 4, 32, 16, 16

    key = jax.random.PRNGKey(0)
    kx, kw_, kg, kb = jax.random.split(key, 4)
    x = jax.random.normal(kx, (N, Cin, H, W), jnp.float32)
    weight = jax.random.normal(kw_, (Cout, Cin, 3, 3), jnp.float32) * 0.1
    gamma = 1.0 + 0.1 * jax.random.normal(kg, (Cout,), jnp.float32)
    beta = 0.1 * jax.random.normal(kb, (Cout,), jnp.float32)

    ref = conv_bn_relu_ref(x, weight, gamma, beta)

    # f32-at-MXU path: tight numerical check of the fused math.
    out_f32 = jax.block_until_ready(
        conv_bn_relu_forward(x, weight, gamma, beta, mxu_dtype=jnp.float32))
    assert out_f32.shape == (N, Cout, H, W)
    err32 = float(jnp.max(jnp.abs(out_f32 - ref)))
    assert err32 < 1e-3, f"f32 path max abs err {err32}"

    # bf16-at-MXU path (default perf config): looser check.
    out_bf16 = jax.block_until_ready(conv_bn_relu_forward(x, weight, gamma, beta))
    assert out_bf16.shape == (N, Cout, H, W)
    err16 = float(jnp.max(jnp.abs(out_bf16 - ref)))
    assert err16 < 5e-2, f"bf16 path max abs err {err16}"

    print("KERNEL_OK")
</pallas_src>

<mosaic_0001>
module attributes {stable_mosaic.version = 11 : i64} {
  func.func @_conv_stats_kernel(%arg0: i32, %arg1: memref<1x4x256xf32, #tpu.memory_space<vmem>>, %arg2: memref<32x40xf32, #tpu.memory_space<vmem>>, %arg3: memref<9x256xf32, #tpu.memory_space<vmem>>, %arg4: memref<1x32x2xf32, #tpu.memory_space<vmem>>, %arg5: memref<40x256xf32, #tpu.memory_space<vmem>>) attributes {dimension_semantics = [#tpu.dimension_semantics<parallel>], iteration_bounds = array<i64: 2>, scalar_prefetch = 0 : i64, scratch_operands = 1 : i64, tpu.core_type = #tpu.core_type<tc>, window_params = [{transform_indices = @transform_0, window_bounds = array<i64: 1, 4, 256>}, {pipeline_mode = #tpu.pipeline_mode<synchronous>, transform_indices = @transform_1, window_bounds = array<i64: 32, 40>}, {pipeline_mode = #tpu.pipeline_mode<synchronous>, transform_indices = @transform_2, window_bounds = array<i64: 9, 256>}, {transform_indices = @transform_3, window_bounds = array<i64: 1, 32, 2>}]} {
    %c0 = arith.constant 0 : index
    %c0_0 = arith.constant 0 : index
    %c0_1 = arith.constant 0 : index
    %0 = vector.load %arg1[%c0, %c0_0, %c0_1] : memref<1x4x256xf32, #tpu.memory_space<vmem>>, vector<1x4x256xf32>
    %1 = vector.shape_cast %0 : vector<1x4x256xf32> to vector<4x256xf32>
    %c0_2 = arith.constant 0 : index
    %c0_3 = arith.constant 0 : index
    %2 = vector.load %arg3[%c0_2, %c0_3] : memref<9x256xf32, #tpu.memory_space<vmem>>, vector<9x256xf32>
    %cst = arith.constant 0.000000e+00 : f32
    %3 = vector.broadcast %cst : f32 to vector<4x256xf32>
    %c36 = arith.constant 36 : index
    %c0_4 = arith.constant 0 : index
    %4 = vector.load %arg5[%c36, %c0_4] : memref<40x256xf32, #tpu.memory_space<vmem>>, vector<4x256xf32>
    tpu.vector_store %arg5[%c36, %c0_4], %3 {strides = array<i32>} : memref<40x256xf32, #tpu.memory_space<vmem>>, vector<4x256xf32>,
    %c17_i32 = arith.constant 17 : i32
    %5 = tpu.dynamic_rotate %1 by %c17_i32 dim 1 : vector<4x256xf32>, i32 -> vector<4x256xf32>
    %6 = vector.extract_strided_slice %2 {offsets = [0, 0], sizes = [1, 256], strides = [1, 1]} : vector<9x256xf32> to vector<1x256xf32>
    %7 = vector.broadcast %6 : vector<1x256xf32> to vector<4x256xf32>
    %8 = arith.mulf %5, %7 : vector<4x256xf32>
    %c0_5 = arith.constant 0 : index
    %c0_6 = arith.constant 0 : index
    %9 = vector.load %arg5[%c0_5, %c0_6] : memref<40x256xf32, #tpu.memory_space<vmem>>, vector<4x256xf32>
    tpu.vector_store %arg5[%c0_5, %c0_6], %8 {strides = array<i32>} : memref<40x256xf32, #tpu.memory_space<vmem>>, vector<4x256xf32>,
    %c16_i32 = arith.constant 16 : i32
    %10 = tpu.dynamic_rotate %1 by %c16_i32 dim 1 : vector<4x256xf32>, i32 -> vector<4x256xf32>
    %11 = vector.extract_strided_slice %2 {offsets = [1, 0], sizes = [1, 256], strides = [1, 1]} : vector<9x256xf32> to vector<1x256xf32>
    %12 = vector.broadcast %11 : vector<1x256xf32> to vector<4x256xf32>
    %13 = arith.mulf %10, %12 : vector<4x256xf32>
    %c4 = arith.constant 4 : index
    %c0_7 = arith.constant 0 : index
    %14 = vector.load %arg5[%c4, %c0_7] : memref<40x256xf32, #tpu.memory_space<vmem>>, vector<4x256xf32>
    tpu.vector_store %arg5[%c4, %c0_7], %13 {strides = array<i32>} : memref<40x256xf32, #tpu.memory_space<vmem>>, vector<4x256xf32>,
    %c15_i32 = arith.constant 15 : i32
    %15 = tpu.dynamic_rotate %1 by %c15_i32 dim 1 : vector<4x256xf32>, i32 -> vector<4x256xf32>
    %16 = vector.extract_strided_slice %2 {offsets = [2, 0], sizes = [1, 256], strides = [1, 1]} : vector<9x256xf32> to vector<1x256xf32>
    %17 = vector.broadcast %16 : vector<1x256xf32> to vector<4x256xf32>
    %18 = arith.mulf %15, %17 : vector<4x256xf32>
    %c8 = arith.constant 8 : index
    %c0_8 = arith.constant 0 : index
    %19 = vector.load %arg5[%c8, %c0_8] : memref<40x256xf32, #tpu.memory_space<vmem>>, vector<4x256xf32>
    tpu.vector_store %arg5[%c8, %c0_8], %18 {strides = array<i32>} : memref<40x256xf32, #tpu.memory_space<vmem>>, vector<4x256xf32>,
    %c1_i32 = arith.constant 1 : i32
    %20 = tpu.dynamic_rotate %1 by %c1_i32 dim 1 : vector<4x256xf32>, i32 -> vector<4x256xf32>
    %21 = vector.extract_strided_slice %2 {offsets = [3, 0], sizes = [1, 256], strides = [1, 1]} : vector<9x256xf32> to vector<1x256xf32>
    %22 = vector.broadcast %21 : vector<1x256xf32> to vector<4x256xf32>
    %23 = arith.mulf %20, %22 : vector<4x256xf32>
    %c12 = arith.constant 12 : index
    %c0_9 = arith.constant 0 : index
    %24 = vector.load %arg5[%c12, %c0_9] : memref<40x256xf32, #tpu.memory_space<vmem>>, vector<4x256xf32>
    tpu.vector_store %arg5[%c12, %c0_9], %23 {strides = array<i32>} : memref<40x256xf32, #tpu.memory_space<vmem>>, vector<4x256xf32>,
    %25 = vector.extract_strided_slice %2 {offsets = [4, 0], sizes = [1, 256], strides = [1, 1]} : vector<9x256xf32> to vector<1x256xf32>
    %26 = vector.broadcast %25 : vector<1x256xf32> to vector<4x256xf32>
    %27 = arith.mulf %1, %26 : vector<4x256xf32>
    %c16 = arith.constant 16 : index
    %c0_10 = arith.constant 0 : index
    %28 = vector.load %arg5[%c16, %c0_10] : memref<40x256xf32, #tpu.memory_space<vmem>>, vector<4x256xf32>
    tpu.vector_store %arg5[%c16, %c0_10], %27 {strides = array<i32>} : memref<40x256xf32, #tpu.memory_space<vmem>>, vector<4x256xf32>,
    %c255_i32 = arith.constant 255 : i32
    %29 = tpu.dynamic_rotate %1 by %c255_i32 dim 1 : vector<4x256xf32>, i32 -> vector<4x256xf32>
    %30 = vector.extract_strided_slice %2 {offsets = [5, 0], sizes = [1, 256], strides = [1, 1]} : vector<9x256xf32> to vector<1x256xf32>
    %31 = vector.broadcast %30 : vector<1x256xf32> to vector<4x256xf32>
    %32 = arith.mulf %29, %31 : vector<4x256xf32>
    %c20 = arith.constant 20 : index
    %c0_11 = arith.constant 0 : index
    %33 = vector.load %arg5[%c20, %c0_11] : memref<40x256xf32, #tpu.memory_space<vmem>>, vector<4x256xf32>
    tpu.vector_store %arg5[%c20, %c0_11], %32 {strides = array<i32>} : memref<40x256xf32, #tpu.memory_space<vmem>>, vector<4x256xf32>,
    %c241_i32 = arith.constant 241 : i32
    %34 = tpu.dynamic_rotate %1 by %c241_i32 dim 1 : vector<4x256xf32>, i32 -> vector<4x256xf32>
    %35 = vector.extract_strided_slice %2 {offsets = [6, 0], sizes = [1, 256], strides = [1, 1]} : vector<9x256xf32> to vector<1x256xf32>
    %36 = vector.broadcast %35 : vector<1x256xf32> to vector<4x256xf32>
    %37 = arith.mulf %34, %36 : vector<4x256xf32>
    %c24 = arith.constant 24 : index
    %c0_12 = arith.constant 0 : index
    %38 = vector.load %arg5[%c24, %c0_12] : memref<40x256xf32, #tpu.memory_space<vmem>>, vector<4x256xf32>
    tpu.vector_store %arg5[%c24, %c0_12], %37 {strides = array<i32>} : memref<40x256xf32, #tpu.memory_space<vmem>>, vector<4x256xf32>,
    %c240_i32 = arith.constant 240 : i32
    %39 = tpu.dynamic_rotate %1 by %c240_i32 dim 1 : vector<4x256xf32>, i32 -> vector<4x256xf32>
    %40 = vector.extract_strided_slice %2 {offsets = [7, 0], sizes = [1, 256], strides = [1, 1]} : vector<9x256xf32> to vector<1x256xf32>
    %41 = vector.broadcast %40 : vector<1x256xf32> to vector<4x256xf32>
    %42 = arith.mulf %39, %41 : vector<4x256xf32>
    %c28 = arith.constant 28 : index
    %c0_13 = arith.constant 0 : index
    %43 = vector.load %arg5[%c28, %c0_13] : memref<40x256xf32, #tpu.memory_space<vmem>>, vector<4x256xf32>
    tpu.vector_store %arg5[%c28, %c0_13], %42 {strides = array<i32>} : memref<40x256xf32, #tpu.memory_space<vmem>>, vector<4x256xf32>,
    %c239_i32 = arith.constant 239 : i32
    %44 = tpu.dynamic_rotate %1 by %c239_i32 dim 1 : vector<4x256xf32>, i32 -> vector<4x256xf32>
    %45 = vector.extract_strided_slice %2 {offsets = [8, 0], sizes = [1, 256], strides = [1, 1]} : vector<9x256xf32> to vector<1x256xf32>
    %46 = vector.broadcast %45 : vector<1x256xf32> to vector<4x256xf32>
    %47 = arith.mulf %44, %46 : vector<4x256xf32>
    %c32 = arith.constant 32 : index
    %c0_14 = arith.constant 0 : index
    %48 = vector.load %arg5[%c32, %c0_14] : memref<40x256xf32, #tpu.memory_space<vmem>>, vector<4x256xf32>
    tpu.vector_store %arg5[%c32, %c0_14], %47 {strides = array<i32>} : memref<40x256xf32, #tpu.memory_space<vmem>>, vector<4x256xf32>,
    %c0_15 = arith.constant 0 : index
    %c0_16 = arith.constant 0 : index
    %49 = vector.load %arg2[%c0_15, %c0_16] : memref<32x40xf32, #tpu.memory_space<vmem>>, vector<32x40xf32>
    %c0_17 = arith.constant 0 : index
    %c0_18 = arith.constant 0 : index
    %50 = vector.load %arg5[%c0_17, %c0_18] : memref<40x256xf32, #tpu.memory_space<vmem>>, vector<40x256xf32>
    %cst_19 = arith.constant dense<0.000000e+00> : vector<32x256xf32>
    %51 = tpu.matmul %49, %50, %cst_19 {dimension_numbers = #tpu.dot_dimension_numbers<[1], [0], [0], [1], [0, 0, 1, 1], [], []>} : vector<32x40xf32>, vector<40x256xf32>, vector<32x256xf32> -> vector<32x256xf32>
    %cst_20 = arith.constant 1.000000e+00 : f32
    %52 = vector.broadcast %cst_20 : f32 to vector<256x1xf32>
    %cst_21 = arith.constant dense<0.000000e+00> : vector<32x1xf32>
    %53 = tpu.matmul %51, %52, %cst_21 {dimension_numbers = #tpu.dot_dimension_numbers<[1], [0], [0], [1], [0, 0, 1, 1], [], []>} : vector<32x256xf32>, vector<256x1xf32>, vector<32x1xf32> -> vector<32x1xf32>
    %54 = arith.mulf %51, %51 : vector<32x256xf32>
    %cst_22 = arith.constant dense<0.000000e+00> : vector<32x1xf32>
    %55 = tpu.matmul %54, %52, %cst_22 {dimension_numbers = #tpu.dot_dimension_numbers<[1], [0], [0], [1], [0, 0, 1, 1], [], []>} : vector<32x256xf32>, vector<256x1xf32>, vector<32x1xf32> -> vector<32x1xf32>
    %56 = tpu.concatenate %53, %55 in 1 : vector<32x1xf32>, vector<32x1xf32> -> vector<32x2xf32>
    %c0_23 = arith.constant 0 : index
    %c0_24 = arith.constant 0 : index
    %c0_25 = arith.constant 0 : index
    %57 = vector.load %arg4[%c0_23, %c0_24, %c0_25] : memref<1x32x2xf32, #tpu.memory_space<vmem>>, vector<1x32x2xf32>
    %58 = vector.shape_cast %57 : vector<1x32x2xf32> to vector<32x2xf32>
    %59 = vector.shape_cast %56 : vector<32x2xf32> to vector<1x32x2xf32>
    tpu.vector_store %arg4[%c0_23, %c0_24, %c0_25], %59 {strides = array<i32>} : memref<1x32x2xf32, #tpu.memory_space<vmem>>, vector<1x32x2xf32>,
    return
  }
  func.func @transform_0(%arg0: i32) -> (i32, i32, i32) {
    %c0_i32 = arith.constant 0 : i32
    %c0_i32_0 = arith.constant 0 : i32
    %c0_i32_1 = arith.constant 0 : i32
    return %arg0, %c0_i32, %c0_i32_0 : i32, i32, i32
  }
  func.func @transform_1(%arg0: i32) -> (i32, i32) {
    %c0_i32 = arith.constant 0 : i32
    %c0_i32_0 = arith.constant 0 : i32
    %c0_i32_1 = arith.constant 0 : i32
    return %c0_i32, %c0_i32_0 : i32, i32
  }
  func.func @transform_2(%arg0: i32) -> (i32, i32) {
    %c0_i32 = arith.constant 0 : i32
    %c0_i32_0 = arith.constant 0 : i32
    %c0_i32_1 = arith.constant 0 : i32
    return %c0_i32, %c0_i32_0 : i32, i32
  }
  func.func @transform_3(%arg0: i32) -> (i32, i32, i32) {
    %c0_i32 = arith.constant 0 : i32
    %c0_i32_0 = arith.constant 0 : i32
    %c0_i32_1 = arith.constant 0 : i32
    return %arg0, %c0_i32, %c0_i32_0 : i32, i32, i32
  }
}

</mosaic_0001>

<bundles_post_ra>
// kernel: tpu_custom_call.1
= control target key start
LH: loop header
LB: loop body
LE: loop exit
PB: predicated region body
PF: predicated region fallthrough
CT: control target
= control target key end

     0   :  { %8 = vsyncpa [#allocation4], 0  ;;  %s1498_s0 = inlined_call_operand.hbm [shape: f32[2,4,256], index: 0, kind: input, shape index: {}]   ;;  %s1499_s1 = inlined_call_operand.hbm [shape: f32[32,40], index: 1, kind: input, shape index: {}]   ;;  %s1500_s2 = inlined_call_operand.hbm [shape: f32[9,256], index: 2, kind: input, shape index: {}]   ;;  %s1501_s3 = inlined_call_operand.vmem [shape: f32[2,32,2], index: 3, kind: output, shape index: {}]  }
   0x1   :  { %10 = vsyncpa [#allocation4 + $0x1], 0 }
   0x2   :  { %11 = vsyncpa [#allocation6], 0  ;;  %s1220_s12 = smov 0   ;;  %s1222_s13 = smov 0  }
   0x3   :  { %s1224_s14 = smov 0   ;;  %s1226_s15 = smov 0  }
   0x4 LB: > { %s1239_s16 = sadd.s32 4294967295, %s1181_s15   ;;  %p37_p0 = scmp.ne.s32.totalorder %s1173_s13, %s1169_s12  ;;  %s1181_s15 = sphi %s1226_s15, %s1516_s15   ;;  %s1177_s14 = sphi %s1224_s14, %s1515_s14   ;;  %s1173_s13 = sphi %s1222_s13, %s1514_s13   ;;  %s1169_s12 = sphi %s1220_s12, %s1513_s12  }
   0x5   : > { %p1502_p1 = scmp.eq.s32.totalorder %s1239_s16, 0  ;;  %p831_p2 = scmp.ge.s32.totalorder %s1181_s15, 1 }
   0x6   : > { %p116_p3 = scmp.lt.s32.totalorder %s1181_s15, 3  ;;  %s1183_s19 = smov [#allocation5]  }
   0x7   : > { %p1247_p4 = por %p1502_p1, %p37_p0  ;;  %s128_s20 = sshll.u32 %s1183_s19, 4  ;;  %s129_s20 = int_to_ptr.vmem [resolvable:$true] %s128_s20 }
   0x8   : > { %p1251_p5 = pnand %p831_p2, %p116_p3  ;;  %s1184_s22 = smov [#allocation7]  }
   0x9   : > { %s1505_s17 = scalar_select %p1247_p4, 1, 0 }
   0xa   : > { %s1506_s18 = scalar_select %p1251_p5, 1, 0 }
   0xb   : > { %p992_p6 = pneg %p1251_p5  ;;  %s141_s23 = sshll.u32 %s1184_s22, 4  ;;  %s1263_s23 = int_to_ptr.vmem [resolvable:$true] %s141_s23 }
   0xc   : > { %s1057_s26 = scalar_lea.hbm %s1499_s1, 512 }
   0xd   : > { %p1259_p7 = pnand %p992_p6, %p1502_p1  ;;  %p1058_p8 = scmp.ne.s32.totalorder %s1499_s1, %s1057_s26 }
   0xe   : > { %p1064_p12 = scmp.lt.u32.totalorder %s1057_s26, %s1499_s1 }
   0xf   : > { %p1059_p9 = pneg %p1259_p7 }
  0x11   : > { %p1060_p10 = pnand %p1059_p9, %p1058_p8 }
  0x13   : > { %p1061_p11 = pneg %p1060_p10 }
  0x15   : > { %p1066_p13 = pnand %p1064_p12, %p1061_p11 }
  0x17   : > { %1069 = shalt.err (!%p1066_p13)
}
  0x18   : > { %s1070_s4 = scalar_lea.vmem %s129_s20, 512  ;;  %p1078_p6 = scmp.lt.s32.totalorder %s129_s20, %s129_s20 }
  0x19   : > { %p1071_p0 = scmp.ne.s32.totalorder %s129_s20, %s1070_s4  ;;  %p1079_p1 = scmp.lt.s32.totalorder %s1070_s4, %s1070_s4 }
  0x1b   : > { %p1073_p2 = pnand %p1071_p0, %p1059_p9  ;;  %p1080_p4 = por %p1079_p1, %p1078_p6 }
  0x1d   : > { %p1074_p3 = pneg %p1073_p2 }
  0x1f   : > { %p1081_p5 = pnand %p1080_p4, %p1074_p3 }
  0x21   : > { %1084 = shalt.err (!%p1081_p5)
}
  0x22   : > { %s1185_s5 = smov 128   ;;  %s1186_s6 = smov 8  }
  0x23   : > { %995 = dma.hbm_to_vmem [thread:$0]  (!%p1259_p7), %s1499_s1, 512, %s129_s20, [#allocation6], %s1185_s5, %s1185_s5, %s1186_s6  }
  0x24   : > { %s1085_s11 = scalar_lea.hbm %s1500_s2, 512 }
  0x25   : > { %p1086_p8 = scmp.ne.s32.totalorder %s1500_s2, %s1085_s11  ;;  %p1092_p5 = scmp.lt.u32.totalorder %s1085_s11, %s1500_s2 }
  0x27   : > { %p1088_p1 = pnand %p1086_p8, %p1059_p9 }
  0x29   : > { %p1089_p4 = pneg %p1088_p1 }
  0x2b   : > { %p1094_p10 = pnand %p1092_p5, %p1089_p4 }
  0x2d   : > { %1097 = shalt.err (!%p1094_p10)
}
  0x2e   : > { %s1098_s20 = scalar_lea.vmem %s1263_s23, 512  ;;  %p1106_p0 = scmp.lt.s32.totalorder %s1263_s23, %s1263_s23 }
  0x2f   : > { %p1099_p11 = scmp.ne.s32.totalorder %s1263_s23, %s1098_s20  ;;  %p1107_p2 = scmp.lt.s32.totalorder %s1098_s20, %s1098_s20 }
  0x31   : > { %p1101_p12 = pnand %p1099_p11, %p1059_p9  ;;  %p1108_p3 = por %p1107_p2, %p1106_p0 }
  0x33   : > { %p1102_p13 = pneg %p1101_p12 }
  0x35   : > { %p1109_p6 = pnand %p1108_p3, %p1102_p13 }
  0x37   : > { %1112 = shalt.err (!%p1109_p6)
}
  0x38   : > { %s1187_s25 = smov 256   ;;  %s1188_s26 = smov 16  }
  0x39   : > { %998 = dma.hbm_to_vmem [thread:$0]  (!%p1259_p7), %s1500_s2, 512, %s1263_s23, [#allocation6], %s1187_s25, %s1187_s25, %s1188_s26  }
  0x3a   : > { %s1313_s29 = sadd.s32 1, %s1181_s15   ;;  %s24_s4 = sadd.s32 1, %s1177_s14 }
  0x3b   : > { %s21_s30 = ssub.s32 %s1181_s15, %s1313_s29  ;;  %p31_p8 = scmp.ne.s32.totalorder %s1177_s14, %s1173_s13 }
  0x3c   : > { %p22_p9 = scmp.eq.s32.totalorder %s21_s30, 0  ;;  %p32_p1 = scmp.eq.s32.totalorder %s1181_s15, 0 }
  0x3d   : > { %p1005_p5 = scmp.lt.s32.totalorder %s1181_s15, 2  ;;  %s155_s6 = sand.u32 1, %s1177_s14  }
  0x3e   : > { %s1322_s5 = scalar_select %p22_p9, %s1177_s14, %s24_s4  }
  0x3f   : > { %p33_p4 = por %p32_p1, %p31_p8  ;;  %s852_s7 = sshll.u32 %s1181_s15, 7 }
  0x40   : > { %s835_s8 = sshll.u32 %s155_s6, 3  ;;  %s1330_s10 = scalar_lea.hbm %s1498_s0, %s852_s7 }
  0x41   : > { %s159_s23 = scalar_lea.vmem [#allocation3], %s835_s8  ;;  %p1332_p7 = pnand %p1005_p5, %p33_p4 }
  0x42   : > { %s167_s11 = sshll.u32 %s159_s23, 4  ;;  %s156_s15 = scalar_lea.sflag [#allocation4], %s155_s6  ;;  %s1336_s11 = int_to_ptr.vmem [resolvable:$true] %s167_s11 }
  0x43   : > { %s1113_s19 = scalar_lea.hbm %s1330_s10, 128  ;;  %p1115_p11 = pneg %p1332_p7 }
  0x44   : > { %p1114_p10 = scmp.ne.s32.totalorder %s1330_s10, %s1113_s19  ;;  %s1118_s20 = scalar_lea.hbm %s1498_s0, 256 }
  0x45   : > { %p1119_p0 = scmp.lt.u32.totalorder %s1330_s10, %s1498_s0  ;;  %p1120_p2 = scmp.lt.u32.totalorder %s1118_s20, %s1113_s19 }
  0x46   : > { %p1116_p12 = pnand %p1115_p11, %p1114_p10  ;;  %p1122_p6 = scmp.lt.u32.totalorder %s1113_s19, %s1330_s10 }
  0x47   : > { %p1121_p3 = por %p1120_p2, %p1119_p0 }
  0x48   : > { %p1117_p13 = pneg %p1116_p12 }
  0x49   : > { %p1123_p9 = por %p1122_p6, %p1121_p3 }
  0x4b   : > { %p1124_p8 = pnand %p1123_p9, %p1117_p13 }
  0x4d   : > { %1127 = shalt.err (!%p1124_p8)
}
  0x4e   : > { %s1128_s27 = scalar_lea.vmem %s1336_s11, 128  ;;  %s1189_s28 = smov [#allocation3]  }
  0x4f   : > { %p1129_p1 = scmp.ne.s32.totalorder %s1336_s11, %s1128_s27  ;;  %s1133_s30 = sshll.u32 %s1189_s28, 4  ;;  %s1134_s30 = int_to_ptr.vmem [resolvable:$false] %s1133_s30 }
  0x50   : > { %s1135_s4 = scalar_lea.vmem %s1134_s30, 256  ;;  %p1136_p10 = scmp.lt.s32.totalorder %s1336_s11, %s1134_s30 }
  0x51   : > { %p1131_p4 = pnand %p1129_p1, %p1115_p11  ;;  %p1137_p12 = scmp.lt.s32.totalorder %s1135_s4, %s1128_s27 }
  0x53   : > { %p1132_p5 = pneg %p1131_p4  ;;  %p1138_p0 = por %p1137_p12, %p1136_p10 }
  0x55   : > { %p1139_p2 = pnand %p1138_p0, %p1132_p5 }
  0x57   : > { %1142 = shalt.err (!%p1139_p2)
}
  0x58   : > { %1002 = dma.hbm_to_vmem [thread:$0]  (!%p1332_p7), %s1330_s10, 128, %s1336_s11, %s156_s15  }
  0x59   : > { %p1509_p13 = scmp.ne.s32.totalorder %s1506_s18, 0 }
  0x5a   : > { %s178_s6 = sand.u32 (!%p1509_p13), 1, %s1173_s13   ;;  %p1510_p11 = scmp.ne.s32.totalorder (!%p1509_p13), %s1505_s17, 0 }
  0x5b   : > { %176 = sbr.rel (%p1509_p13) target bundleno = 821 (0x335), region = 32  ;;  %s839_s7 = sshll.u32 (!%p1509_p13), %s178_s6, 3 }
  0x5c   : > { %s179_s8 = scalar_lea.sflag (!%p1509_p13), [#allocation4], %s178_s6  ;;  %s182_s21 = scalar_lea.vmem (!%p1509_p13), [#allocation3], %s839_s7 }
  0x62   : > { %1160 = dma.done.wait (%p1510_p11), %s179_s8, 128  }
  0x63   : > { %1162 = vsyncadd (%p1510_p11), %s179_s8, 4294967168  ;;  %p1511_p3 = scmp.eq.s32.totalorder %s1239_s16, 0 }
  0x65   : > { %1164 = dma.done.wait (%p1511_p3), [#allocation6], 1024   ;;  %p1512_p6 = pmov %p1511_p3 }
  0x66   : > { %v232_v0 = vlaneseq  ;;  %v218_v7 = vld [vmem:[%s182_s21] sm:$0xff]  ;;  %v219_v8 = vld [vmem:[#allocation7] sm:$0xff]  ;;  %v220_v9 = vld [vmem:[#allocation7 + $0x8] sm:$0xff]  ;;  %s1190_s18 = smov 1   ;;  %s1191_s17 = smov 16   ;;  %v1196_v33 = vmov 0.0  }
  0x67   : > { %1166 = vsyncadd (%p1512_p6), [#allocation6], 4294966272  ;;  %293 = vrot.lane.b32.xlu1 %v218_v7, %s1190_s18  ;;  %249 = vrot.lane.b32.xlu0 %v218_v7, %s1191_s17  ;;  %v226_v10 = vcombine.high %v218_v7, %v218_v7  ;;  %s1192_s9 = smov 17   ;;  %s1193_s10 = smov 15   ;;  %224 = vst [vmem:[#allocation2 + $0x48] sm:$0xf0] %v1196_v33 }
  0x68   : > { %v238_v1 = vshrl.u32 %v232_v0, 7  ;;  %s1194_s23 = smov 127   ;;  %s1195_s11 = smov 112   ;;  %223 = vst [vmem:[#allocation2 + $0x40] sm:$0xf0] %v1196_v33  ;;  %515 = vmatprep.mubr.f32.mxu0 %v1196_v33  ;;  %v1425_v35 = vand.u32 127, %v232_v0 }
  0x69   : > { %s1197_s12 = smov 113   ;;  %s1198_s15 = smov 111   ;;  %v1199_v34 = vmov 1.0|1.0   ;;  %vm438_vm8 = vcmask 326656   ;;  %vm734_vm9 = vcmask 7168  }
  0x6a   : > { %v302_v2 = vsub.s32 3, %v238_v1  ;;  %v320_v3 = vsub.s32 4, %v238_v1  ;;  %v239_v4 = vsub.s32 0, %v238_v1  ;;  %v258_v5 = vsub.s32 1, %v238_v1  ;;  %950 = vmatprep.subr.bf16.mxu1 %v1199_v34  ;;  %p213_p7 = scmp.lt.s32.totalorder %s1239_s16, 1 }
  0x6b   : > { %v283_v6 = vsub.s32 2, %v238_v1  ;;  %v345_v13 = vsub.s32 5, %v238_v1  ;;  %228 = vrot.lane.b32.xlu0 %v218_v7, %s1192_s9  ;;  %295 = vrot.lane.b32.xlu1 %v226_v10, %s1190_s18  ;;  %v389_v25 = vsub.s32 7, %v238_v1  ;;  %v370_v30 = vsub.s32 6, %v238_v1 }
  0x6c   : > { %v1376_v11 = vrot.slane %v219_v8, %v302_v2  ;;  %v1378_v12 = vrot.slane %v220_v9, %v302_v2  ;;  %v321_v14 = vrot.slane %v219_v8, %v320_v3  ;;  %v325_v15 = vrot.slane %v220_v9, %v320_v3  ;;  %951 = vmatpush3.bf16.msra.mxu1 %v1199_v34  ;;  %s1518_s16 = smov (!%p213_p7, %s1239_s16), 1 }
  0x6d   : > { %v1380_v16 = vrot.slane %v219_v8, %v239_v4  ;;  %v1382_v17 = vrot.slane %v220_v9, %v239_v4  ;;  %v1384_v18 = vrot.slane %v219_v8, %v258_v5  ;;  %v1386_v19 = vrot.slane %v220_v9, %v258_v5  ;;  %952 = vmatprep.subr.bf16.mxu1 %v1199_v34  ;;  %s853_s19 = sshll.u32 %s1518_s16, 5 }
  0x6e   : > { %v1388_v20 = vrot.slane %v219_v8, %v283_v6  ;;  %v1390_v21 = vrot.slane %v220_v9, %v283_v6  ;;  %v328_v22 = vcombine.low %v321_v14, %v325_v15  ;;  %v1392_v23 = vrot.slane %v219_v8, %v345_v13  ;;  %s217_s20 = scalar_lea.vmem %s1501_s3, %s853_s19 }
  0x6f   : > { %v1394_v24 = vrot.slane %v220_v9, %v345_v13  ;;  %v1397_v27 = vrot.slane %v219_v8, %v389_v25  ;;  %v1399_v28 = vrot.slane %v220_v9, %v389_v25  ;;  %230 = vrot.lane.b32.xlu1 %v226_v10, %s1192_s9  ;;  %251 = vrot.lane.b32.xlu0 %v226_v10, %s1191_s17  ;;  %vm297_vm0 = vcmp.lt.s32.totalorder %v1425_v35, 1 }
  0x70   : > { %v330_v26 = vmul.f32 %v328_v22, %v218_v7  ;;  %v1401_v31 = vrot.slane %v219_v8, %v370_v30  ;;  %v1403_v32 = vrot.slane %v220_v9, %v370_v30  ;;  %953 = vmatpush3.bf16.msra.mxu1 %v1199_v34  ;;  %vm234_vm1 = vcmp.lt.s32.totalorder %v1425_v35, 17 }
  0x71   : > { %954 = vmatprep.subr.bf16.mxu1 %v1199_v34  ;;  %vm253_vm2 = vcmp.lt.s32.totalorder %v1425_v35, 16  ;;  %vm278_vm3 = vcmp.lt.s32.totalorder %v1425_v35, 15  ;;  %vm340_vm4 = vcmp.lt.s32.totalorder %v1425_v35, 127  ;;  %vm384_vm5 = vcmp.lt.s32.totalorder %v1425_v35, 112 }
  0x72   : > { %334 = vst [vmem:[#allocation2 + $0x20] sm:$0xf] %v330_v26  ;;  %v332_v29 = vcombine.high %v330_v26, %v330_v26  ;;  %vm365_vm6 = vcmp.lt.s32.totalorder %v1425_v35, 113  ;;  %vm409_vm7 = vcmp.lt.s32.totalorder %v1425_v35, 111  ;;  %vm739_vm10 = vcmask 15360  }
  0x73   : > { %276 = vrot.lane.b32.xlu1 %v226_v10, %s1193_s10  ;;  %274 = vrot.lane.b32.xlu0 %v218_v7, %s1193_s10 }
  0x74   : > { %335 = vst [vmem:[#allocation2 + $0x28] sm:$0xf] %v332_v29  ;;  %955 = vmatpush3.bf16.msra.mxu1 %v1199_v34  ;;  %v845_v29 = vld [vmem:[#allocation7 + $0x18] ss:$0 sm:$0xff] }
  0x75   : > { %956 = vmatprep.subr.bf16.mxu1 %v1199_v34 }
  0x77   : > { %338 = vrot.lane.b32.xlu1 %v226_v10, %s1194_s23  ;;  %336 = vrot.lane.b32.xlu0 %v218_v7, %s1194_s23 }
  0x78   : > { %957 = vmatpush3.bf16.msra.mxu1 %v1199_v34 }
  0x79   : > { %958 = vmatprep.subr.bf16.mxu1 %v1199_v34 }
  0x7b   : > { %382 = vrot.lane.b32.xlu1 %v226_v10, %s1195_s11  ;;  %380 = vrot.lane.b32.xlu0 %v218_v7, %s1195_s11 }
  0x7c   : > { %959 = vmatpush3.bf16.msra.mxu1 %v1199_v34 }
  0x7d   : > { %960 = vmatprep.subr.bf16.mxu1 %v1199_v34 }
  0x7f   : > { %363 = vrot.lane.b32.xlu1 %v226_v10, %s1197_s12  ;;  %361 = vrot.lane.b32.xlu0 %v218_v7, %s1197_s12 }
  0x80   : > { %961 = vmatpush3.bf16.msra.mxu1 %v1199_v34 }
  0x81   : > { %962 = vmatprep.subr.bf16.mxu1 %v1199_v34 }
  0x83   : > { %407 = vrot.lane.b32.xlu1 %v226_v10, %s1198_s15  ;;  %405 = vrot.lane.b32.xlu0 %v218_v7, %s1198_s15 }
  0x84   : > { %963 = vmatpush3.bf16.msra.mxu1 %v1199_v34 }
  0x85   : > { %964 = vmatprep.subr.bf16.mxu1 %v1199_v34 }
  0x88   : > { %965 = vmatpush3.bf16.msra.mxu1 %v1199_v34 }
  0xd9   : > { %v294_v36 = vpop.permute.xlu1 %293  ;;  %v250_v37 = vpop.permute.xlu0 %249 }
  0xdd   : > { %v229_v38 = vpop.permute.xlu0 %228  ;;  %v296_v39 = vpop.permute.xlu1 %295 }
  0xde   : > { %v298_v40 = vsel %vm297_vm0, %v294_v36, %v296_v39  ;;  %v299_v41 = vsel %vm297_vm0, %v296_v39, %v294_v36 }
  0xdf   : > { %v308_v42 = vmul.f32 %v1376_v11, %v299_v41  ;;  %v309_v43 = vmul.f32 %v1378_v12, %v298_v40 }
  0xe1   : > { %v312_v44 = vrot.slane %v308_v42, 4  ;;  %v313_v45 = vrot.slane %v309_v43, 4  ;;  %v231_v46 = vpop.permute.xlu1 %230  ;;  %v252_v47 = vpop.permute.xlu0 %251 }
  0xe2   : > { %v235_v48 = vsel %vm234_vm1, %v229_v38, %v231_v46  ;;  %v236_v49 = vsel %vm234_vm1, %v231_v46, %v229_v38  ;;  %v254_v50 = vsel %vm253_vm2, %v250_v37, %v252_v47  ;;  %v255_v51 = vsel %vm253_vm2, %v252_v47, %v250_v37  ;;  %v424_v46 = vld [vmem:[#allocation5] sm:$0xff]  ;;  %v425_v47 = vld [vmem:[#allocation5 + $0x8] sm:$0xff] }
  0xe3   : > { %316 = vst [vmem:[#allocation2 + $0x10] sm:$0xf0] %v312_v44  ;;  %317 = vst [vmem:[#allocation2 + $0x18] sm:$0xf0] %v313_v45  ;;  %v245_v52 = vmul.f32 %v1380_v16, %v236_v49  ;;  %v246_v53 = vmul.f32 %v1382_v17, %v235_v48  ;;  %v264_v54 = vmul.f32 %v1384_v18, %v255_v51  ;;  %v426_v48 = vld [vmem:[#allocation5 + $0x10] sm:$0xff]  ;;  %v427_v49 = vld [vmem:[#allocation5 + $0x18] sm:$0xff] }
  0xe4   : > { %v265_v55 = vmul.f32 %v1386_v19, %v254_v50 }
  0xe5   : > { %247 = vst [vmem:[#allocation2] sm:$0xf] %v245_v52  ;;  %248 = vst [vmem:[#allocation2 + $0x8] sm:$0xf] %v246_v53  ;;  %v268_v56 = vrot.slane %v264_v54, 4  ;;  %v277_v58 = vpop.permute.xlu1 %276  ;;  %v275_v59 = vpop.permute.xlu0 %274 }
  0xe6   : > { %v269_v57 = vrot.slane %v265_v55, 4  ;;  %v279_v60 = vsel %vm278_vm3, %v275_v59, %v277_v58  ;;  %v280_v61 = vsel %vm278_vm3, %v277_v58, %v275_v59 }
  0xe7   : > { %272 = vst [vmem:[#allocation2] sm:$0xf0] %v268_v56  ;;  %v289_v62 = vmul.f32 %v1388_v20, %v280_v61  ;;  %v290_v63 = vmul.f32 %v1390_v21, %v279_v60 }
  0xe8   : > { %273 = vst [vmem:[#allocation2 + $0x8] sm:$0xf0] %v269_v57 }
  0xe9   : > { %291 = vst [vmem:[#allocation2 + $0x10] sm:$0xf] %v289_v62  ;;  %292 = vst [vmem:[#allocation2 + $0x18] sm:$0xf] %v290_v63  ;;  %v339_v0 = vpop.permute.xlu1 %338  ;;  %v337_v1 = vpop.permute.xlu0 %336 }
  0xea   : > { %v341_v2 = vsel %vm340_vm4, %v337_v1, %v339_v0  ;;  %v342_v3 = vsel %vm340_vm4, %v339_v0, %v337_v1 }
  0xeb   : > { %v351_v4 = vmul.f32 %v1392_v23, %v341_v2  ;;  %v352_v5 = vmul.f32 %v1394_v24, %v342_v3 }
  0xed   : > { %v355_v6 = vrot.slane %v351_v4, 4  ;;  %v356_v7 = vrot.slane %v352_v5, 4  ;;  %v383_v8 = vpop.permute.xlu1 %382  ;;  %v381_v9 = vpop.permute.xlu0 %380 }
  0xee   : > { %v385_v10 = vsel %vm384_vm5, %v381_v9, %v383_v8  ;;  %v386_v11 = vsel %vm384_vm5, %v383_v8, %v381_v9  ;;  %v428_v16 = vld [vmem:[#allocation2] sm:$0xff] }
  0xef   : > { %359 = vst [vmem:[#allocation2 + $0x20] sm:$0xf0] %v355_v6  ;;  %360 = vst [vmem:[#allocation2 + $0x28] sm:$0xf0] %v356_v7  ;;  %v395_v12 = vmul.f32 %v1397_v27, %v385_v10  ;;  %v396_v13 = vmul.f32 %v1399_v28, %v386_v11  ;;  %v429_v14 = vld [vmem:[#allocation2 + $0x8] sm:$0xff] }
  0xf0   : > { %v431_v15 = vld [vmem:[#allocation2 + $0x18] sm:$0xff]  ;;  %v430_v17 = vld [vmem:[#allocation2 + $0x10] sm:$0xff] }
  0xf1   : > { %v399_v18 = vrot.slane %v395_v12, 4  ;;  %v400_v19 = vrot.slane %v396_v13, 4  ;;  %v364_v20 = vpop.permute.xlu1 %363  ;;  %v362_v21 = vpop.permute.xlu0 %361  ;;  %v942_v22 = vpack.c.bf16 %v431_v15, %v429_v14  ;;  %v944_v23 = vpack.c.bf16 %v430_v17, %v428_v16  ;;  %v844_v28 = vld [vmem:[#allocation7 + $0x10] ss:$0 sm:$0xff] }
  0xf2   : > { %v366_v24 = vsel %vm365_vm6, %v362_v21, %v364_v20  ;;  %v367_v25 = vsel %vm365_vm6, %v364_v20, %v362_v21 }
  0xf3   : > { %403 = vst [vmem:[#allocation2 + $0x30] sm:$0xf0] %v399_v18  ;;  %404 = vst [vmem:[#allocation2 + $0x38] sm:$0xf0] %v400_v19  ;;  %v376_v26 = vmul.f32 %v1401_v31, %v366_v24  ;;  %v377_v27 = vmul.f32 %v1403_v32, %v367_v25  ;;  %943 = vmatprep.subr.bf16.mxu0 %v942_v22 }
  0xf4   : > { %945 = vmatpush1.bf16.msra.mxu0 %v944_v23 }
  0xf5   : > { %378 = vst [vmem:[#allocation2 + $0x30] sm:$0xf] %v376_v26  ;;  %379 = vst [vmem:[#allocation2 + $0x38] sm:$0xf] %v377_v27  ;;  %v408_v30 = vpop.permute.xlu1 %407  ;;  %v406_v36 = vpop.permute.xlu0 %405 }
  0xf6   : > { %v410_v37 = vsel %vm409_vm7, %v406_v36, %v408_v30  ;;  %v411_v38 = vsel %vm409_vm7, %v408_v30, %v406_v36  ;;  %v433_v41 = vld [vmem:[#allocation2 + $0x28] sm:$0xff]  ;;  %v432_v42 = vld [vmem:[#allocation2 + $0x20] sm:$0xff] }
  0xf7   : > { %v420_v39 = vmul.f32 %v844_v28, %v410_v37  ;;  %v421_v40 = vmul.f32 %v845_v29, %v411_v38 }
  0xf9   : > { %422 = vst [vmem:[#allocation2 + $0x40] sm:$0xf] %v420_v39  ;;  %423 = vst [vmem:[#allocation2 + $0x48] sm:$0xf] %v421_v40 }
  0xfc   : > { %v435_v31 = vld [vmem:[#allocation2 + $0x38] sm:$0xff]  ;;  %v434_v32 = vld [vmem:[#allocation2 + $0x30] sm:$0xff] }
  0xfd   : > { %v946_v43 = vpack.c.bf16 %v435_v31, %v433_v41  ;;  %v948_v44 = vpack.c.bf16 %v434_v32, %v432_v42 }
  0xff   : > { %947 = vmatprep.subr.bf16.mxu0 %v946_v43 }
 0x100   : > { %949 = vmatpush1.bf16.msra.mxu0 %v948_v44  ;;  %v437_v35 = vld [vmem:[#allocation2 + $0x48] sm:$0xff]  ;;  %v436_v45 = vld [vmem:[#allocation2 + $0x40] sm:$0xff] }
 0x101   : > { %459 = vmatprep.subr.mxu0 %v437_v35 }
 0x104   : > { %460 = vmatpush1.msra.mxu0 %v436_v45 }
 0x105   : > { %846 = vmatmul.mubr.msk.f32.vlgmr.msra.gmra.mrb[0].mxu0 %vm438_vm8, %v424_v46  ;;  %966 = vmatprep.subr.bf16.mxu0 %v1199_v34 }
 0x106   : > { %521 = vmatprep.mubr.f32.mxu0 %v1196_v33  ;;  %967 = vmatpush3.bf16.msra.mxu0 %v1199_v34 }
 0x107   : > { %968 = vmatprep.subr.bf16.mxu0 %v1199_v34 }
 0x109   : > { %847 = vmatmul.mubr.msk.f32.gmra.mrb[2].mxu0 %vm438_vm8, %v425_v47 }
 0x10a   : > { %527 = vmatprep.mubr.f32.mxu0 %v1196_v33  ;;  %969 = vmatpush3.bf16.msra.mxu0 %v1199_v34 }
 0x10b   : > { %970 = vmatprep.subr.bf16.mxu0 %v1199_v34 }
 0x10d   : > { %848 = vmatmul.mubr.msk.f32.gmra.mrb[4].mxu0 %vm438_vm8, %v426_v48 }
 0x10e   : > { %533 = vmatprep.mubr.f32.mxu0 %v1196_v33  ;;  %971 = vmatpush3.bf16.msra.mxu0 %v1199_v34 }
 0x10f   : > { %972 = vmatprep.subr.bf16.mxu0 %v1199_v34 }
 0x111   : > { %849 = vmatmul.mubr.msk.f32.gmra.mrb[6].mxu0 %vm438_vm8, %v427_v49 }
 0x112   : > { %973 = vmatpush3.bf16.msra.mxu0 %v1199_v34 }
 0x113   : > { %974 = vmatprep.subr.bf16.mxu0 %v1199_v34 }
 0x116   : > { %975 = vmatpush3.bf16.msra.mxu0 %v1199_v34 }
 0x117   : > { %976 = vmatprep.subr.bf16.mxu0 %v1199_v34 }
 0x11a   : > { %977 = vmatpush3.bf16.msra.mxu0 %v1199_v34 }
 0x11b   : > { %978 = vmatprep.subr.bf16.mxu0 %v1199_v34 }
 0x11e   : > { %979 = vmatpush3.bf16.msra.mxu0 %v1199_v34 }
 0x11f   : > { %980 = vmatprep.subr.bf16.mxu0 %v1199_v34 }
 0x122   : > { %981 = vmatpush3.bf16.msra.mxu0 %v1199_v34 }
 0x1d8   : > { %v517_v33 = vpop.f32.mrb[0].mxu0 }
 0x1d9   : > { %v519_v50 = vpop.f32.mrb[1].mxu0  ;;  %v625_v52 = vmul.f32 %v517_v33, %v517_v33 }
 0x1da   : > { %v626_v51 = vmul.f32 %v519_v50, %v519_v50  ;;  %604 = vmatprep.mubr.f32.mxu1 %v519_v50 }
 0x1db   : > { %605 = vmatmul.mubr.f32.vlgmr.msra.gmra.mrb[0].mxu1 %v517_v33 }
 0x1dc   : > { %v523_v53 = vpop.f32.mrb[2].mxu0  ;;  %697 = vmatprep.mubr.f32.mxu0 %v626_v51 }
 0x1dd   : > { %v525_v54 = vpop.f32.mrb[3].mxu0  ;;  %698 = vmatmul.mubr.f32.vlgmr.msra.gmra.mrb[8].mxu0 %v625_v52  ;;  %v627_v56 = vmul.f32 %v523_v53, %v523_v53 }
 0x1de   : > { %v628_v55 = vmul.f32 %v525_v54, %v525_v54  ;;  %609 = vmatprep.mubr.f32.mxu1 %v525_v54 }
 0x1df   : > { %610 = vmatmul.mubr.f32.gmra.mrb[2].mxu1 %v523_v53 }
 0x1e0   : > { %v529_v57 = vpop.f32.mrb[4].mxu0  ;;  %702 = vmatprep.mubr.f32.mxu0 %v628_v55 }
 0x1e1   : > { %v531_v58 = vpop.f32.mrb[5].mxu0  ;;  %703 = vmatmul.mubr.f32.gmra.mrb[10].mxu0 %v627_v56  ;;  %v629_v34 = vmul.f32 %v529_v57, %v529_v57 }
 0x1e2   : > { %v630_v59 = vmul.f32 %v531_v58, %v531_v58  ;;  %614 = vmatprep.mubr.f32.mxu1 %v531_v58 }
 0x1e3   : > { %615 = vmatmul.mubr.f32.gmra.mrb[4].mxu1 %v529_v57 }
 0x1e4   : > { %v535_v60 = vpop.f32.mrb[6].mxu0  ;;  %707 = vmatprep.mubr.f32.mxu0 %v630_v59 }
 0x1e5   : > { %v537_v61 = vpop.f32.mrb[7].mxu0  ;;  %708 = vmatmul.mubr.f32.gmra.mrb[12].mxu0 %v629_v34  ;;  %v631_v63 = vmul.f32 %v535_v60, %v535_v60 }
 0x1e6   : > { %v632_v62 = vmul.f32 %v537_v61, %v537_v61  ;;  %619 = vmatprep.mubr.f32.mxu1 %v537_v61 }
 0x1e7   : > { %620 = vmatmul.mubr.f32.gmra.mrb[6].mxu1 %v535_v60 }
 0x1e8   : > { %712 = vmatprep.mubr.f32.mxu0 %v632_v62 }
 0x1e9   : > { %713 = vmatmul.mubr.f32.gmra.mrb[14].mxu0 %v631_v63 }
 0x2ae   : > { %v886_v0 = vpop.f32.mrb[0].mxu1 }
 0x2af   : > { %v887_v1 = vpop.f32.mrb[1].mxu1 }
 0x2b0   : > { %v888_v2 = vadd.f32 %v887_v1, %v886_v0  ;;  %v930_v3 = vpop.f32.mrb[8].mxu0 }
 0x2b1   : > { %v931_v4 = vpop.f32.mrb[9].mxu0 }
 0x2b2   : > { %v932_v5 = vadd.f32 %v931_v4, %v930_v3  ;;  %v889_v6 = vpop.f32.mrb[2].mxu1 }
 0x2b3   : > { %v890_v7 = vpop.f32.mrb[3].mxu1 }
 0x2b4   : > { %v891_v8 = vadd.f32 %v890_v7, %v889_v6  ;;  %v933_v9 = vpop.f32.mrb[10].mxu0  ;;  %722 = vrot.lane.b32.xlu0 %v932_v5, %s1190_s18 }
 0x2b5   : > { %v934_v10 = vpop.f32.mrb[11].mxu0 }
 0x2b6   : > { %v935_v11 = vadd.f32 %v934_v10, %v933_v9  ;;  %v892_v12 = vpop.f32.mrb[4].mxu1 }
 0x2b7   : > { %v893_v13 = vpop.f32.mrb[5].mxu1 }
 0x2b8   : > { %v894_v14 = vadd.f32 %v893_v13, %v892_v12  ;;  %v936_v15 = vpop.f32.mrb[12].mxu0  ;;  %724 = vrot.lane.b32.xlu1 %v935_v11, %s1190_s18 }
 0x2b9   : > { %v937_v16 = vpop.f32.mrb[13].mxu0 }
 0x2ba   : > { %v938_v17 = vadd.f32 %v937_v16, %v936_v15  ;;  %v895_v18 = vpop.f32.mrb[6].mxu1 }
 0x2bb   : > { %v896_v19 = vpop.f32.mrb[7].mxu1 }
 0x2bc   : > { %v897_v20 = vadd.f32 %v896_v19, %v895_v18  ;;  %726 = vrot.lane.b32.xlu0 %v938_v17, %s1190_s18  ;;  %v939_v21 = vpop.f32.mrb[14].mxu0 }
 0x2bd   : > { %v940_v22 = vpop.f32.mrb[15].mxu0 }
 0x2be   : > { %v941_v23 = vadd.f32 %v940_v22, %v939_v21 }
 0x2c0   : > { %728 = vrot.lane.b32.xlu1 %v941_v23, %s1190_s18 }
 0x326   : > { %v723_v24 = vpop.permute.xlu0 %722 }
 0x327   : > { %v735_v25 = vsel %vm734_vm9, %v888_v2, %v723_v24 }
 0x328   : > { %740 = vst.msk [vmem:[%s217_s20] sm:$0xff] %vm739_vm10, %v735_v25 }
 0x32a   : > { %v725_v26 = vpop.permute.xlu1 %724 }
 0x32b   : > { %v736_v27 = vsel %vm734_vm9, %v891_v8, %v725_v26 }
 0x32c   : > { %741 = vst.msk [vmem:[%s217_s20 + $0x8] sm:$0xff] %vm739_vm10, %v736_v27 }
 0x32e   : > { %v727_v28 = vpop.permute.xlu0 %726 }
 0x32f   : > { %v737_v29 = vsel %vm734_vm9, %v894_v14, %v727_v28 }
 0x330   : > { %742 = vst.msk [vmem:[%s217_s20 + $0x10] sm:$0xff] %vm739_vm10, %v737_v29 }
 0x332   : > { %v729_v30 = vpop.permute.xlu1 %728 }
 0x333   : > { %v738_v36 = vsel %vm734_vm9, %v897_v20, %v729_v30 }
 0x334   : > { %743 = vst.msk [vmem:[%s217_s20 + $0x18] sm:$0xff] %vm739_vm10, %v738_v36 }
 0x335 PF: > { %p14_p9 = scmp.ge.s32.totalorder %s1313_s29, 4   ;;  %s1513_s12 = smov %s1173_s13 }
 0x336   : > { %s1514_s13 = smov %s1177_s14  ;;  %s1515_s14 = smov %s1322_s5 }
 0x337   : > { %s1516_s15 = smov %s1313_s29  ;;  %16 = sbr.rel (!%p14_p9) target bundleno = 4 (0x4), region = 80 }
 0x33e   :  { %765 = vsyncpa [#allocation4], 1 }
 0x33f   :  { %767 = vsyncpa [#allocation4 + $0x1], 1 }
 0x340   :  { %768 = vsyncpa [#allocation6], 1 }

</bundles_post_ra>
